<compile_context>
chip_gen: v6e
topology: v6e:2x2x1
jax: 0.10.0
libtpu: 0.0.40
codegen_flags: <defaults>
</compile_context>

<pallas_src>
import jax
import jax.numpy as jnp
from jax.experimental import pallas as pl
from jax.experimental.pallas import tpu as pltpu


# -----------------------------------------------------------------------------
# Small-shape path: gridless, no padding, weight pre-transposed in the wrapper.
# -----------------------------------------------------------------------------
def _linear_small_kernel(x_ref, wt_ref, b_ref, o_ref):
    """y = x @ W_T + b at logical width.

    x_ref:  (B, K) f32
    wt_ref: (K, N) f32  -- weight already transposed in the wrapper, so the MXU
                           consumes it directly (no in-kernel transpose/pad).
    b_ref:  (1, N) f32
    o_ref:  (B, N) f32  -- stored at logical width (masked store is noise at
                           small N; no padding, no wrapper-side slice).
    """
    o_ref[...] = (
        jnp.dot(x_ref[...], wt_ref[...], preferred_element_type=jnp.float32)
        + b_ref[...]
    ).astype(o_ref.dtype)


def _categorical_forward_small(x, weight, bias):
    B, K = x.shape
    N = weight.shape[0]

    wt = weight.T.astype(x.dtype)          # one-time tiny layout change (O(N*K))
    b2d = bias.reshape(1, N).astype(x.dtype)

    flops = 2 * B * K * N                  # logical work (not padded)
    bytes_accessed = x.dtype.itemsize * (x.size + weight.size + bias.size + B * N)

    return pl.pallas_call(
        _linear_small_kernel,
        out_shape=jax.ShapeDtypeStruct((B, N), x.dtype),
        # Gridless call, full-array VMEM blocks: no pipelining machinery for a
        # single-step problem.
        in_specs=[
            pl.BlockSpec(memory_space=pltpu.MemorySpace.VMEM),  # x
            pl.BlockSpec(memory_space=pltpu.MemorySpace.VMEM),  # weight.T (K, N)
            pl.BlockSpec(memory_space=pltpu.MemorySpace.VMEM),  # bias (1, N)
        ],
        out_specs=pl.BlockSpec(memory_space=pltpu.MemorySpace.VMEM),
        cost_estimate=pl.CostEstimate(
            flops=flops, transcendentals=0, bytes_accessed=bytes_accessed),
    )(x, wt, b2d)


# -----------------------------------------------------------------------------
# Scaled path: tiled, pipelined, K-accumulating grid kernel.
# -----------------------------------------------------------------------------
def _linear_tiled_kernel(x_ref, wt_ref, b_ref, o_ref, acc_ref):
    """One (tm, tn) output tile, accumulated over the K grid axis.

    x_ref:  (tm, tk) f32    wt_ref: (tk, tn) f32    b_ref: (1, tn) f32
    o_ref:  (tm, tn) f32    acc_ref: (tm, tn) f32 VMEM scratch
    """
    @pl.when(pl.program_id(2) == 0)
    def _():
        acc_ref[...] = jnp.zeros_like(acc_ref)

    acc_ref[...] += jnp.dot(x_ref[...], wt_ref[...],
                            preferred_element_type=jnp.float32)

    @pl.when(pl.program_id(2) == pl.num_programs(2) - 1)
    def _():
        o_ref[...] = (acc_ref[...] + b_ref[...]).astype(o_ref.dtype)


def _categorical_forward_tiled(x, weight, bias, *, tm=128, tn=256, tk=256):
    """y = x @ weight.T + bias via a tiled/pipelined grid (large shapes).

    Wrapper zero-pads M/K/N to tile multiples (cheap fused XLA pads); padded K
    rows contribute 0 to the accumulation and padded N lanes carry a zero bias,
    so slicing back recovers the exact result.
    """
    B, K = x.shape
    N = weight.shape[0]

    def rup(v, m):
        return ((v + m - 1) // m) * m

    Mp, Kp, Np = rup(B, tm), rup(K, tk), rup(N, tn)

    xp = jnp.pad(x, ((0, Mp - B), (0, Kp - K)))
    wtp = jnp.pad(weight.T.astype(x.dtype), ((0, Kp - K), (0, Np - N)))
    bp = jnp.pad(bias.astype(x.dtype), (0, Np - N)).reshape(1, Np)

    grid = (Mp // tm, Np // tn, Kp // tk)
    flops = 2 * B * K * N                  # logical work only
    bytes_accessed = x.dtype.itemsize * (x.size + weight.size + bias.size + B * N)

    yp = pl.pallas_call(
        _linear_tiled_kernel,
        out_shape=jax.ShapeDtypeStruct((Mp, Np), x.dtype),
        grid_spec=pltpu.PrefetchScalarGridSpec(
            num_scalar_prefetch=0,
            grid=grid,
            in_specs=[
                pl.BlockSpec((tm, tk), lambda i, j, k: (i, k)),   # x tile
                pl.BlockSpec((tk, tn), lambda i, j, k: (k, j)),   # W^T tile
                pl.BlockSpec((1, tn), lambda i, j, k: (0, j)),    # bias tile
            ],
            out_specs=pl.BlockSpec((tm, tn), lambda i, j, k: (i, j)),
            scratch_shapes=[pltpu.VMEM((tm, tn), jnp.float32)],
        ),
        compiler_params=pltpu.CompilerParams(
            # M/N parallel (megacore / v7x 2-TC sharding), K is the reduction.
            dimension_semantics=("parallel", "parallel", "arbitrary"),
            # Explicit budget: fits v5e (16 MiB scoped default would also be
            # fine at these tiles), v6e (32/128) and v7x (32/64).
            vmem_limit_bytes=32 * 1024 * 1024,
        ),
        cost_estimate=pl.CostEstimate(
            flops=flops, transcendentals=0, bytes_accessed=bytes_accessed),
    )(xp, wtp, bp)

    return yp[:B, :N] if (Mp, Np) != (B, N) else yp


# -----------------------------------------------------------------------------
# Dispatcher: Categorical.forward(x) == Linear(x)
# -----------------------------------------------------------------------------
def categorical_forward(x, weight, bias):
    """Forward of Categorical: y = x @ weight.T + bias.

    x:      (B, num_inputs)            float32
    weight: (num_outputs, num_inputs)  float32  (PyTorch nn.Linear convention)
    bias:   (num_outputs,)             float32
    returns (B, num_outputs)           float32
    """
    B, K = x.shape
    N, k2 = weight.shape
    assert k2 == K, "weight/input feature-dim mismatch"

    # Operand footprint heuristic: toy shapes stay on the gridless path (they
    # are launch-overhead bound anyway); real workloads get the tiled pipeline.
    footprint_bytes = x.dtype.itemsize * (B * K + N * K + B * N)
    if footprint_bytes > (2 << 20):
        return _categorical_forward_tiled(x, weight, bias)
    return _categorical_forward_small(x, weight, bias)


if __name__ == "__main__":
    key = jax.random.PRNGKey(0)
    k_x, k_w, k_b, k_x2, k_w2, k_b2 = jax.random.split(key, 6)

    # --- small path: shapes matching the module's typical RL usage ---
    batch, num_inputs, num_outputs = 8, 32, 16
    x = jax.random.normal(k_x, (batch, num_inputs), dtype=jnp.float32)
    bound = 1.0 / (num_inputs ** 0.5)
    weight = jax.random.uniform(k_w, (num_outputs, num_inputs),
                                minval=-bound, maxval=bound, dtype=jnp.float32)
    bias = jax.random.uniform(k_b, (num_outputs,),
                              minval=-bound, maxval=bound, dtype=jnp.float32)

    y = jax.block_until_ready(categorical_forward(x, weight, bias))
    y_ref = x @ weight.T + bias
    assert y.shape == (batch, num_outputs)
    assert jnp.allclose(y, y_ref, atol=1e-5, rtol=1e-5), "small-path mismatch"

    # --- tiled path: exercise the grid / accumulator / padding machinery ---
    B2, K2, N2 = 256, 384, 320      # non-multiples of the tiles on K and N
    x2 = jax.random.normal(k_x2, (B2, K2), dtype=jnp.float32)
    bound2 = 1.0 / (K2 ** 0.5)
    w2 = jax.random.uniform(k_w2, (N2, K2),
                            minval=-bound2, maxval=bound2, dtype=jnp.float32)
    b2 = jax.random.uniform(k_b2, (N2,),
                            minval=-bound2, maxval=bound2, dtype=jnp.float32)

    y2 = jax.block_until_ready(_categorical_forward_tiled(x2, w2, b2))
    y2_ref = x2 @ w2.T + b2
    assert y2.shape == (B2, N2)
    assert jnp.allclose(y2, y2_ref, atol=1e-2, rtol=1e-2), "tiled-path mismatch"

    print("KERNEL_OK")
</pallas_src>

<mosaic_0001>
module attributes {stable_mosaic.version = 11 : i64} {
  func.func @_linear_small_kernel(%arg0: memref<8x32xf32, #tpu.memory_space<vmem>>, %arg1: memref<32x16xf32, #tpu.memory_space<vmem>>, %arg2: memref<1x16xf32, #tpu.memory_space<vmem>>, %arg3: memref<8x16xf32, #tpu.memory_space<vmem>>) attributes {dimension_semantics = [], scalar_prefetch = 0 : i64, scratch_operands = 0 : i64, tpu.core_type = #tpu.core_type<tc>} {
    %c0 = arith.constant 0 : index
    %c0_0 = arith.constant 0 : index
    %0 = vector.load %arg0[%c0, %c0_0] : memref<8x32xf32, #tpu.memory_space<vmem>>, vector<8x32xf32>
    %c0_1 = arith.constant 0 : index
    %c0_2 = arith.constant 0 : index
    %1 = vector.load %arg1[%c0_1, %c0_2] : memref<32x16xf32, #tpu.memory_space<vmem>>, vector<32x16xf32>
    %cst = arith.constant dense<0.000000e+00> : vector<8x16xf32>
    %2 = tpu.matmul %0, %1, %cst {dimension_numbers = #tpu.dot_dimension_numbers<[1], [0], [0], [1], [0, 0, 1, 1], [], []>} : vector<8x32xf32>, vector<32x16xf32>, vector<8x16xf32> -> vector<8x16xf32>
    %c0_3 = arith.constant 0 : index
    %c0_4 = arith.constant 0 : index
    %3 = vector.load %arg2[%c0_3, %c0_4] : memref<1x16xf32, #tpu.memory_space<vmem>>, vector<1x16xf32>
    %4 = vector.broadcast %3 : vector<1x16xf32> to vector<8x16xf32>
    %5 = arith.addf %2, %4 : vector<8x16xf32>
    %c0_5 = arith.constant 0 : index
    %c0_6 = arith.constant 0 : index
    %6 = vector.load %arg3[%c0_5, %c0_6] : memref<8x16xf32, #tpu.memory_space<vmem>>, vector<8x16xf32>
    tpu.vector_store %arg3[%c0_5, %c0_6], %5 {strides = array<i32>} : memref<8x16xf32, #tpu.memory_space<vmem>>, vector<8x16xf32>,
    return
  }
}

</mosaic_0001>

<bundles_post_ra>
// kernel: tpu_custom_call.1
= control target key start
LH: loop header
LB: loop body
LE: loop exit
PB: predicated region body
PF: predicated region fallthrough
CT: control target
= control target key end

     0   :  { %v160_v1 = vmov 0.0   ;;  %vm161_vm0 = vmmov 0   ;;  %s204_s0 = inlined_call_operand.vmem [shape: f32[8,32], index: 0, kind: input, shape index: {}]   ;;  %s205_s1 = inlined_call_operand.vmem [shape: f32[32,16], index: 1, kind: input, shape index: {}]   ;;  %s206_s2 = inlined_call_operand.vmem [shape: f32[1,16], index: 2, kind: input, shape index: {}]   ;;  %s207_s3 = inlined_call_operand.hbm [shape: f32[8,16], index: 3, kind: output, shape index: {}]  }
   0x1   :  { %v19_v0 = vld [vmem:[%s205_s1 + $0x18] sm:$0xff]  ;;  %124 = vmatprep.subr.mxu0 %v160_v1  ;;  %v18_v2 = vld [vmem:[%s205_s1 + $0x10] sm:$0xff]  ;;  %132 = vmatprep.mubr.msk.f32.mxu0 %vm161_vm0, %v160_v1 }
   0x2   :  { %125 = vmatpush3.msra.mxu0 %v19_v0 }
   0x3   :  { %8 = vsyncpa [#allocation3], 0  ;;  %126 = vmatprep.subr.mxu0 %v160_v1  ;;  %v17_v3 = vld [vmem:[%s205_s1 + $0x8] sm:$0xff]  ;;  %v16_v4 = vld [vmem:[%s205_s1] sm:$0xff]  ;;  %vm27_vm1 = vcmask 261120   ;;  %s162_s24 = smov [#allocation2]  }
   0x4   :  { %127 = vmatpush3.msra.mxu0 %v18_v2  ;;  %v15_v5 = vld [vmem:[%s204_s0] sm:$0xff]  ;;  %s109_s25 = sshll.u32 %s162_s24, 4  ;;  %vm101_vm2 = vcmask 130048   ;;  %s110_s25 = int_to_ptr.vmem [resolvable:$true] %s109_s25 }
   0x5   :  { %128 = vmatprep.subr.mxu0 %v160_v1  ;;  %v117_v6 = vld [vmem:[%s206_s2] ss:$0 sm:$0xff]  ;;  %s138_s1 = scalar_lea.vmem %s110_s25, 128  ;;  %p143_p1 = scmp.lt.s32.totalorder %s110_s25, %s110_s25 }
   0x6   :  { %129 = vmatpush3.msra.mxu0 %v17_v3  ;;  %p139_p0 = scmp.ne.s32.totalorder %s110_s25, %s138_s1  ;;  %p144_p2 = scmp.lt.s32.totalorder %s138_s1, %s138_s1 }
   0x7   :  { %130 = vmatprep.subr.mxu0 %v160_v1 }
   0x8   :  { %131 = vmatpush3.msra.mxu0 %v16_v4  ;;  %p145_p3 = por %p144_p2, %p143_p1 }
   0x9   :  { %133 = vmatmul.mubr.msk.f32.vlgmr.msra.gmra.mxu0 %vm27_vm1, %v15_v5 }
   0xa   :  { %p146_p4 = pnand %p145_p3, %p139_p0 }
  0xc9   :  { %v97_v7 = vpop.f32.mrf.mxu0 }
  0xca   :  { %v98_v8 = vadd.f32 %v117_v6, %v97_v7 }
  0xcb   :  { %v134_v9 = vpop.f32.mrf.mxu0 }
  0xcc   :  { %102 = vst.msk [vmem:[#allocation2] sm:$0xff] %vm101_vm2, %v98_v8 }
  0xcd   :  { %149 = shalt.err (!%p146_p4)
}
  0xce   :  { %112 = dma.vmem_to_hbm [thread:$0]  %s110_s25, 128, %s207_s3, [#allocation3]  }
  0xcf   :  { %158 = dma.done.wait [#allocation3], 128  }
  0xd0   :  { %159 = vsyncadd [#allocation3], 4294967168 }
  0xd1   :  { %116 = vsyncpa [#allocation3], 1 }

</bundles_post_ra>
